<compile_context>
chip_gen: v7x
topology: tpu7x:2x2x1
jax: 0.10.0
libtpu: 0.0.40
codegen_flags: <defaults>
</compile_context>

<pallas_src>
import functools

import jax
import jax.numpy as jnp
from jax.experimental import pallas as pl
from jax.experimental.pallas import tpu as pltpu


def _round_up(n, m):
    return ((n + m - 1) // m) * m


def _frnn_fused_kernel(epsilon, ip, hp, act_ref, w1_ref, w2_ref, w3_ref, out_ref):
    """One batch tile: 3 fused MXU matmuls + tanh/residual updates.

    act_ref : (TILE_B, ip + 2*hp)  = [ x_pad | h_old_pad | h2_old_pad(+1 lane) ]
    w1_ref  : (ip + 2*hp, hp)      stage-1 fused weight (ith_bias folded in)
    w2_ref  : (2*hp, hp)           stage-2 fused weight (h2_bias folded in)
    w3_ref  : (hp, op)             output weight (o_bias folded in)
    out_ref : (TILE_B, op + 2*hp)  = [ output_pad | hidden_pad | hidden2_pad ]
    """
    act = act_ref[...]
    h_old = act[:, ip:ip + hp]
    h2_old = act[:, ip + hp:ip + 2 * hp]

    # Stage 1: x@ith.T + h_old@hth.T + h2_old@(-fb.T) + b_ih  (one matmul)
    pre_h = jnp.dot(act, w1_ref[...], preferred_element_type=jnp.float32)
    hidden = h_old + epsilon * jnp.tanh(pre_h)

    # Stage 2: hidden@fb + h2_old@h2th2.T + b_h2  (one matmul)
    act2 = jnp.concatenate([hidden, h2_old], axis=1)
    pre_h2 = jnp.dot(act2, w2_ref[...], preferred_element_type=jnp.float32)
    hidden2 = h2_old + epsilon * jnp.tanh(pre_h2)

    # Stage 3: hidden2@hto.T + b_o  (bias folded via the "1" lane in hidden2)
    out = jnp.dot(hidden2, w3_ref[...], preferred_element_type=jnp.float32)

    # Single lane-dense output slab.
    out_ref[...] = jnp.concatenate([out, hidden, hidden2], axis=1)


def frnn_as_sc_forward(params, x, hidden_old, hidden2_old,
                       *, epsilon=0.1, gamma=0.15):
    """Parameter prep + padding (glue, pure JAX) then fused Pallas kernel."""
    f32 = jnp.float32
    B, I = x.shape
    H = params["hth_weights"].shape[0]
    O = params["hto_weights"].shape[0]

    # Lane-dense padded widths. Hp reserves one spare lane (index H) for the
    # constant-1 column that folds the biases into the matmuls.
    Ip = _round_up(max(I, 1), 128)
    Hp = _round_up(H + 1, 128)
    Op = _round_up(max(O, 1), 128)

    TILE_B = 128 if B >= 128 else _round_up(B, 8)
    B_pad = _round_up(B, TILE_B)

    eye = jnp.eye(H, dtype=f32)
    hth = (params["hth_weights"] - params["hth_weights"].T) - gamma * eye
    fb = params["fb_weights"] - gamma * eye
    h2th2 = (params["h2th2_weights"] - params["h2th2_weights"].T) - gamma * eye

    # ---- fused / padded weights (biases folded at the "1" lane = row Hp+H of
    # the h2 segment for stage 1, row Hp+H for stage 2, row H for stage 3) ----
    K1 = Ip + 2 * Hp
    W1 = jnp.zeros((K1, Hp), f32)
    W1 = W1.at[:I, :H].set(params["ith_weights"].T.astype(f32))
    W1 = W1.at[Ip:Ip + H, :H].set(hth.T)
    W1 = W1.at[Ip + Hp:Ip + Hp + H, :H].set(-fb.T)
    W1 = W1.at[Ip + Hp + H, :H].set(params["ith_bias"].astype(f32))

    W2 = jnp.zeros((2 * Hp, Hp), f32)
    W2 = W2.at[:H, :H].set(fb)                       # hidden @ fb (untransposed)
    W2 = W2.at[Hp:Hp + H, :H].set(h2th2.T)
    W2 = W2.at[Hp + H, :H].set(params["h2_bias"].astype(f32))

    W3 = jnp.zeros((Hp, Op), f32)
    W3 = W3.at[:H, :O].set(params["hto_weights"].T.astype(f32))
    W3 = W3.at[H, :O].set(params["o_bias"].astype(f32))

    # ---- padded activation slab [x | h_old | h2_old], plus the "1" lane ----
    act = jnp.zeros((B_pad, K1), f32)
    act = act.at[:B, :I].set(x.astype(f32))
    act = act.at[:B, Ip:Ip + H].set(hidden_old.astype(f32))
    act = act.at[:B, Ip + Hp:Ip + Hp + H].set(hidden2_old.astype(f32))
    act = act.at[:, Ip + Hp + H].set(1.0)            # bias-folding ones column

    out_w = Op + 2 * Hp
    kernel = functools.partial(_frnn_fused_kernel, epsilon, Ip, Hp)

    slab = pl.pallas_call(
        kernel,
        out_shape=jax.ShapeDtypeStruct((B_pad, out_w), f32),
        grid=(B_pad // TILE_B,),
        in_specs=[
            pl.BlockSpec((TILE_B, K1), lambda i: (i, 0)),     # activations (streamed)
            pl.BlockSpec((K1, Hp), lambda i: (0, 0)),         # W1 (VMEM-resident)
            pl.BlockSpec((2 * Hp, Hp), lambda i: (0, 0)),     # W2 (VMEM-resident)
            pl.BlockSpec((Hp, Op), lambda i: (0, 0)),         # W3 (VMEM-resident)
        ],
        out_specs=pl.BlockSpec((TILE_B, out_w), lambda i: (i, 0)),
        compiler_params=pltpu.CompilerParams(
            dimension_semantics=("parallel",)),               # shard batch on v7x
    )(act, W1, W2, W3)

    output = slab[:B, :O]
    hidden = slab[:B, Op:Op + H]
    hidden2 = slab[:B, Op + Hp:Op + Hp + H]
    return output, hidden, hidden2


def init_params(key, input_size, hidden_size, output_size):
    """Deterministic parameter init mirroring the torch module's __init__."""
    ks = jax.random.split(key, 5)
    H = hidden_size
    return {
        "ith_weights": jax.random.normal(ks[0], (H, input_size), jnp.float32) * 1.0,
        "hto_weights": jax.random.normal(ks[1], (output_size, H), jnp.float32) * (1.0 / H),
        "hth_weights": jax.random.normal(ks[2], (H, H), jnp.float32) * (1.0 / H),
        "h2th2_weights": jax.random.normal(ks[3], (H, H), jnp.float32) * (1.0 / H),
        "fb_weights": jax.random.normal(ks[4], (H, H), jnp.float32) * (1.0 / output_size),
        "ith_bias": jnp.zeros((H,), jnp.float32),
        "h2_bias": jnp.zeros((H,), jnp.float32),
        "o_bias": jnp.zeros((output_size,), jnp.float32),
    }


def frnn_as_sc_reference(params, x, hidden_old, hidden2_old,
                         *, epsilon=0.1, gamma=0.15):
    """Pure-JAX reference (mirrors the torch forward exactly)."""
    H = params["hth_weights"].shape[0]
    eye = jnp.eye(H, dtype=jnp.float32)
    hth = (params["hth_weights"] - params["hth_weights"].T) - gamma * eye
    fb = params["fb_weights"] - gamma * eye
    h2th2 = (params["h2th2_weights"] - params["h2th2_weights"].T) - gamma * eye

    hidden = jnp.tanh(x @ params["ith_weights"].T
                      + hidden_old @ hth.T
                      + hidden2_old @ (-fb.T)
                      + params["ith_bias"])
    hidden = hidden_old + epsilon * hidden
    hidden2 = jnp.tanh(hidden @ fb
                       + hidden2_old @ h2th2.T
                       + params["h2_bias"])
    hidden2 = hidden2_old + epsilon * hidden2
    output = hidden2 @ params["hto_weights"].T + params["o_bias"]
    return output, hidden, hidden2


if __name__ == "__main__":
    B, INPUT, HIDDEN, OUTPUT = 8, 8, 32, 16

    key = jax.random.PRNGKey(0)
    kp, kx, kh, kh2 = jax.random.split(key, 4)

    params = init_params(kp, INPUT, HIDDEN, OUTPUT)
    x = jax.random.normal(kx, (B, INPUT), jnp.float32)
    hidden_old = jax.random.normal(kh, (B, HIDDEN), jnp.float32)
    hidden2_old = jax.random.normal(kh2, (B, HIDDEN), jnp.float32)

    out, hid, hid2 = frnn_as_sc_forward(params, x, hidden_old, hidden2_old)
    jax.block_until_ready((out, hid, hid2))

    ref_out, ref_hid, ref_hid2 = frnn_as_sc_reference(params, x, hidden_old, hidden2_old)
    assert out.shape == (B, OUTPUT) and hid.shape == (B, HIDDEN) and hid2.shape == (B, HIDDEN)
    assert jnp.allclose(out, ref_out, atol=1e-4, rtol=1e-4)
    assert jnp.allclose(hid, ref_hid, atol=1e-4, rtol=1e-4)
    assert jnp.allclose(hid2, ref_hid2, atol=1e-4, rtol=1e-4)

    print("KERNEL_OK")
</pallas_src>

<mosaic_0001>
module attributes {stable_mosaic.version = 11 : i64} {
  func.func @_frnn_fused_kernel(%arg0: i32, %arg1: memref<8x384xf32, #tpu.memory_space<vmem>>, %arg2: memref<384x128xf32, #tpu.memory_space<vmem>>, %arg3: memref<256x128xf32, #tpu.memory_space<vmem>>, %arg4: memref<128x128xf32, #tpu.memory_space<vmem>>, %arg5: memref<8x384xf32, #tpu.memory_space<vmem>>) attributes {dimension_semantics = [#tpu.dimension_semantics<parallel>], iteration_bounds = array<i64: 1>, scalar_prefetch = 0 : i64, scratch_operands = 0 : i64, tpu.core_type = #tpu.core_type<tc>, window_params = [{transform_indices = @transform_0, window_bounds = array<i64: 8, 384>}, {pipeline_mode = #tpu.pipeline_mode<synchronous>, transform_indices = @transform_1, window_bounds = array<i64: 384, 128>}, {pipeline_mode = #tpu.pipeline_mode<synchronous>, transform_indices = @transform_2, window_bounds = array<i64: 256, 128>}, {pipeline_mode = #tpu.pipeline_mode<synchronous>, transform_indices = @transform_3, window_bounds = array<i64: 128, 128>}, {transform_indices = @transform_4, window_bounds = array<i64: 8, 384>}]} {
    %c0 = arith.constant 0 : index
    %c0_0 = arith.constant 0 : index
    %0 = vector.load %arg1[%c0, %c0_0] : memref<8x384xf32, #tpu.memory_space<vmem>>, vector<8x384xf32>
    %1 = vector.extract_strided_slice %0 {offsets = [0, 128], sizes = [8, 128], strides = [1, 1]} : vector<8x384xf32> to vector<8x128xf32>
    %2 = vector.extract_strided_slice %0 {offsets = [0, 256], sizes = [8, 128], strides = [1, 1]} : vector<8x384xf32> to vector<8x128xf32>
    %c0_1 = arith.constant 0 : index
    %c0_2 = arith.constant 0 : index
    %3 = vector.load %arg2[%c0_1, %c0_2] : memref<384x128xf32, #tpu.memory_space<vmem>>, vector<384x128xf32>
    %cst = arith.constant dense<0.000000e+00> : vector<8x128xf32>
    %4 = tpu.matmul %0, %3, %cst {dimension_numbers = #tpu.dot_dimension_numbers<[1], [0], [0], [1], [0, 0, 1, 1], [], []>} : vector<8x384xf32>, vector<384x128xf32>, vector<8x128xf32> -> vector<8x128xf32>
    %5 = math.tanh %4 : vector<8x128xf32>
    %cst_3 = arith.constant 1.000000e-01 : f32
    %6 = vector.broadcast %cst_3 : f32 to vector<8x128xf32>
    %7 = arith.mulf %6, %5 : vector<8x128xf32>
    %8 = arith.addf %1, %7 : vector<8x128xf32>
    %9 = tpu.concatenate %8, %2 in 1 : vector<8x128xf32>, vector<8x128xf32> -> vector<8x256xf32>
    %c0_4 = arith.constant 0 : index
    %c0_5 = arith.constant 0 : index
    %10 = vector.load %arg3[%c0_4, %c0_5] : memref<256x128xf32, #tpu.memory_space<vmem>>, vector<256x128xf32>
    %cst_6 = arith.constant dense<0.000000e+00> : vector<8x128xf32>
    %11 = tpu.matmul %9, %10, %cst_6 {dimension_numbers = #tpu.dot_dimension_numbers<[1], [0], [0], [1], [0, 0, 1, 1], [], []>} : vector<8x256xf32>, vector<256x128xf32>, vector<8x128xf32> -> vector<8x128xf32>
    %12 = math.tanh %11 : vector<8x128xf32>
    %cst_7 = arith.constant 1.000000e-01 : f32
    %13 = vector.broadcast %cst_7 : f32 to vector<8x128xf32>
    %14 = arith.mulf %13, %12 : vector<8x128xf32>
    %15 = arith.addf %2, %14 : vector<8x128xf32>
    %c0_8 = arith.constant 0 : index
    %c0_9 = arith.constant 0 : index
    %16 = vector.load %arg4[%c0_8, %c0_9] : memref<128x128xf32, #tpu.memory_space<vmem>>, vector<128x128xf32>
    %cst_10 = arith.constant dense<0.000000e+00> : vector<8x128xf32>
    %17 = tpu.matmul %15, %16, %cst_10 {dimension_numbers = #tpu.dot_dimension_numbers<[1], [0], [0], [1], [0, 0, 1, 1], [], []>} : vector<8x128xf32>, vector<128x128xf32>, vector<8x128xf32> -> vector<8x128xf32>
    %18 = tpu.concatenate %17, %8, %15 in 1 : vector<8x128xf32>, vector<8x128xf32>, vector<8x128xf32> -> vector<8x384xf32>
    %c0_11 = arith.constant 0 : index
    %c0_12 = arith.constant 0 : index
    %19 = vector.load %arg5[%c0_11, %c0_12] : memref<8x384xf32, #tpu.memory_space<vmem>>, vector<8x384xf32>
    tpu.vector_store %arg5[%c0_11, %c0_12], %18 {strides = array<i32>} : memref<8x384xf32, #tpu.memory_space<vmem>>, vector<8x384xf32>,
    return
  }
  func.func @transform_0(%arg0: i32) -> (i32, i32) {
    %c0_i32 = arith.constant 0 : i32
    %c0_i32_0 = arith.constant 0 : i32
    return %arg0, %c0_i32 : i32, i32
  }
  func.func @transform_1(%arg0: i32) -> (i32, i32) {
    %c0_i32 = arith.constant 0 : i32
    %c0_i32_0 = arith.constant 0 : i32
    %c0_i32_1 = arith.constant 0 : i32
    return %c0_i32, %c0_i32_0 : i32, i32
  }
  func.func @transform_2(%arg0: i32) -> (i32, i32) {
    %c0_i32 = arith.constant 0 : i32
    %c0_i32_0 = arith.constant 0 : i32
    %c0_i32_1 = arith.constant 0 : i32
    return %c0_i32, %c0_i32_0 : i32, i32
  }
  func.func @transform_3(%arg0: i32) -> (i32, i32) {
    %c0_i32 = arith.constant 0 : i32
    %c0_i32_0 = arith.constant 0 : i32
    %c0_i32_1 = arith.constant 0 : i32
    return %c0_i32, %c0_i32_0 : i32, i32
  }
  func.func @transform_4(%arg0: i32) -> (i32, i32) {
    %c0_i32 = arith.constant 0 : i32
    %c0_i32_0 = arith.constant 0 : i32
    return %arg0, %c0_i32 : i32, i32
  }
}

</mosaic_0001>

<bundles_post_ra>
// kernel: tpu_custom_call.1
= control target key start
LH: loop header
LB: loop body
LE: loop exit
PB: predicated region body
PF: predicated region fallthrough
CT: control target
= control target key end

     0   :  { %9 = vsyncpa [#allocation3], 0  ;;  %s1027_s0 = inlined_call_operand.hbm [shape: f32[8,384], index: 0, kind: input, shape index: {}]   ;;  %s1028_s1 = inlined_call_operand.hbm [shape: f32[384,128], index: 1, kind: input, shape index: {}]   ;;  %s1029_s2 = inlined_call_operand.hbm [shape: f32[256,128], index: 2, kind: input, shape index: {}]   ;;  %s1030_s3 = inlined_call_operand.hbm [shape: f32[128,128], index: 3, kind: input, shape index: {}]   ;;  %s1031_s4 = inlined_call_operand.hbm [shape: f32[8,384], index: 4, kind: output, shape index: {}]  }
   0x1   :  { %10 = vsyncpa [#allocation6], 0 }
   0x2   :  { %11 = vsyncpa [#allocation9], 0 }
   0x3   :  { %12 = vsyncpa [#allocation4], 0  ;;  %s894_s15 = smov [#allocation5]   ;;  %s776_s19 = scalar_lea.hbm %s1028_s1, 6144 }
   0x4   :  { %s28_s16 = sshll.u32 %s894_s15, 4  ;;  %p777_p0 = scmp.ne.s32.totalorder %s1028_s1, %s776_s19  ;;  %s29_s16 = int_to_ptr.vmem [resolvable:$true] %s28_s16 }
   0x5   :  { %p780_p1 = scmp.lt.u32.totalorder %s776_s19, %s1028_s1 }
   0x7   :  { %p782_p2 = pnand %p780_p1, %p777_p0 }
   0x9   :  { %785 = shalt.err (!%p782_p2)
}
   0xa   :  { %s786_s24 = scalar_lea.vmem %s29_s16, 6144  ;;  %p791_p4 = scmp.lt.s32.totalorder %s29_s16, %s29_s16 }
   0xb   :  { %p787_p3 = scmp.ne.s32.totalorder %s29_s16, %s786_s24  ;;  %p792_p5 = scmp.lt.s32.totalorder %s786_s24, %s786_s24 }
   0xd   :  { %p793_p6 = por %p792_p5, %p791_p4 }
   0xf   :  { %p794_p7 = pnand %p793_p6, %p787_p3 }
  0x11   :  { %797 = shalt.err (!%p794_p7)
}
  0x12   :  { %s895_s25 = smov 128   ;;  %s896_s26 = smov 8  }
  0x13   :  { %34 = dma.hbm_to_vmem [thread:$0]  %s1028_s1, 6144, %s29_s16, [#allocation6], %s895_s25, %s895_s25, %s896_s26  }
  0x14   :  { %s897_s29 = smov [#allocation2]   ;;  %s898_s5 = smov [#allocation7]  }
  0x15   :  { %s19_s30 = sshll.u32 %s897_s29, 4  ;;  %s40_s6 = sshll.u32 %s898_s5, 4  ;;  %s20_s30 = int_to_ptr.vmem [resolvable:$true] %s19_s30  ;;  %s41_s6 = int_to_ptr.vmem [resolvable:$true] %s40_s6 }
  0x16   :  { %s798_s9 = scalar_lea.hbm %s1027_s0, 384 }
  0x17   :  { %p799_p8 = scmp.ne.s32.totalorder %s1027_s0, %s798_s9  ;;  %p802_p9 = scmp.lt.u32.totalorder %s798_s9, %s1027_s0 }
  0x19   :  { %p804_p10 = pnand %p802_p9, %p799_p8 }
  0x1b   :  { %807 = shalt.err (!%p804_p10)
}
  0x1c   :  { %s808_s1 = scalar_lea.vmem %s20_s30, 384  ;;  %p813_p12 = scmp.lt.s32.totalorder %s20_s30, %s20_s30 }
  0x1d   :  { %p809_p11 = scmp.ne.s32.totalorder %s20_s30, %s808_s1  ;;  %p814_p13 = scmp.lt.s32.totalorder %s808_s1, %s808_s1 }
  0x1f   :  { %p815_p0 = por %p814_p13, %p813_p12 }
  0x21   :  { %p816_p1 = pnand %p815_p0, %p809_p11 }
  0x23   :  { %819 = shalt.err (!%p816_p1)
}
  0x24   :  { %22 = dma.hbm_to_vmem [thread:$0]  %s1027_s0, 384, %s20_s30, [#allocation3]  }
  0x25   :  { %s820_s18 = scalar_lea.hbm %s1029_s2, 4096 }
  0x26   :  { %p821_p2 = scmp.ne.s32.totalorder %s1029_s2, %s820_s18  ;;  %p824_p3 = scmp.lt.u32.totalorder %s820_s18, %s1029_s2 }
  0x28   :  { %p826_p4 = pnand %p824_p3, %p821_p2 }
  0x2a   :  { %829 = shalt.err (!%p826_p4)
}
  0x2b   :  { %s830_s23 = scalar_lea.vmem %s41_s6, 4096  ;;  %p835_p6 = scmp.lt.s32.totalorder %s41_s6, %s41_s6 }
  0x2c   :  { %p831_p5 = scmp.ne.s32.totalorder %s41_s6, %s830_s23  ;;  %p836_p7 = scmp.lt.s32.totalorder %s830_s23, %s830_s23 }
  0x2e   :  { %p837_p8 = por %p836_p7, %p835_p6 }
  0x30   :  { %p838_p9 = pnand %p837_p8, %p831_p5 }
  0x32   :  { %841 = shalt.err (!%p838_p9)
}
  0x33   :  { %46 = dma.hbm_to_vmem [thread:$0]  %s1029_s2, 4096, %s41_s6, [#allocation6], %s895_s25, %s895_s25, %s896_s26  }
  0x34   :  { %s899_s27 = smov [#allocation8]   ;;  %s842_s5 = scalar_lea.hbm %s1030_s3, 2048 }
  0x35   :  { %s52_s28 = sshll.u32 %s899_s27, 4  ;;  %p843_p10 = scmp.ne.s32.totalorder %s1030_s3, %s842_s5  ;;  %s53_s28 = int_to_ptr.vmem [resolvable:$true] %s52_s28 }
  0x36   :  { %p846_p11 = scmp.lt.u32.totalorder %s842_s5, %s1030_s3 }
  0x38   :  { %p848_p12 = pnand %p846_p11, %p843_p10 }
  0x3a   :  { %851 = shalt.err (!%p848_p12)
}
  0x3b   :  { %s852_s11 = scalar_lea.vmem %s53_s28, 2048  ;;  %p857_p0 = scmp.lt.s32.totalorder %s53_s28, %s53_s28 }
  0x3c   :  { %p853_p13 = scmp.ne.s32.totalorder %s53_s28, %s852_s11  ;;  %p858_p1 = scmp.lt.s32.totalorder %s852_s11, %s852_s11 }
  0x3e   :  { %p859_p2 = por %p858_p1, %p857_p0 }
  0x40   :  { %p860_p3 = pnand %p859_p2, %p853_p13 }
  0x42   :  { %863 = shalt.err (!%p860_p3)
}
  0x43   :  { %58 = dma.hbm_to_vmem [thread:$0]  %s1030_s3, 2048, %s53_s28, [#allocation9], %s895_s25, %s895_s25, %s896_s26  }
  0x44   :  { %886 = dma.done.wait [#allocation3], 384  }
  0x45   :  { %887 = vsyncadd [#allocation3], 4294966912 }
  0x46   :  { %888 = dma.done.wait [#allocation6], 10240  }
  0x47   :  { %889 = vsyncadd [#allocation6], 4294957056 }
  0x48   :  { %890 = dma.done.wait [#allocation9], 2048  }
  0x49   :  { %891 = vsyncadd [#allocation9], 4294965248  ;;  %v900_v0 = vmov 0.0|0.0   ;;  %vm901_vm0 = vmmov 0   ;;  %v902_v1 = vmov 0.0   ;;  %v90_v2 = vld [vmem:[#allocation5 + $0x80] sm:$0xff] }
  0x4a   :  { %682 = vmatprep.subr.bf16.mxu1 %v900_v0  ;;  %612 = vmatprep.mubr.msk.f32.mxu1 %vm901_vm0, %v902_v1  ;;  %v91_v3 = vld [vmem:[#allocation5 + $0x88] sm:$0xff]  ;;  %v74_v4 = vld [vmem:[#allocation5] sm:$0xff]  ;;  %v92_v11 = vld [vmem:[#allocation5 + $0x90] sm:$0xff]  ;;  %s903_s3 = smov [#allocation10]  }
  0x4b   :  { %v650_v5 = vpack.c.bf16 %v91_v3, %v90_v2  ;;  %v75_v6 = vld [vmem:[#allocation5 + $0x8] sm:$0xff]  ;;  %v106_v7 = vld [vmem:[#allocation5 + $0x100] sm:$0xff]  ;;  %v93_v12 = vld [vmem:[#allocation5 + $0x98] sm:$0xff]  ;;  %s465_s25 = sshll.u32 %s903_s3, 4  ;;  %s466_s25 = int_to_ptr.vmem [resolvable:$true] %s465_s25 }
  0x4c   :  { %v107_v8 = vld [vmem:[#allocation5 + $0x108] sm:$0xff]  ;;  %v652_v9 = vpack.c.bf16 %v75_v6, %v74_v4  ;;  %v76_v13 = vld [vmem:[#allocation5 + $0x10] sm:$0xff]  ;;  %v654_v14 = vpack.c.bf16 %v93_v12, %v92_v11  ;;  %v77_v15 = vld [vmem:[#allocation5 + $0x18] sm:$0xff]  ;;  %s864_s26 = scalar_lea.vmem %s466_s25, 384  ;;  %p869_p5 = scmp.lt.s32.totalorder %s466_s25, %s466_s25 }
  0x4d   :  { %v683_v10 = vpack.c.bf16 %v107_v8, %v106_v7  ;;  %651 = vmatprep.subr.bf16.mxu0 %v650_v5  ;;  %v108_v16 = vld [vmem:[#allocation5 + $0x110] sm:$0xff]  ;;  %v109_v17 = vld [vmem:[#allocation5 + $0x118] sm:$0xff]  ;;  %v656_v18 = vpack.c.bf16 %v77_v15, %v76_v13  ;;  %v94_v20 = vld [vmem:[#allocation5 + $0xa0] sm:$0xff]  ;;  %p865_p4 = scmp.ne.s32.totalorder %s466_s25, %s864_s26  ;;  %p870_p6 = scmp.lt.s32.totalorder %s864_s26, %s864_s26 }
  0x4e   :  { %653 = vmatpush3.bf16.msra.mxu0 %v652_v9  ;;  %v686_v19 = vpack.c.bf16 %v109_v17, %v108_v16  ;;  %v95_v21 = vld [vmem:[#allocation5 + $0xa8] sm:$0xff]  ;;  %v78_v22 = vld [vmem:[#allocation5 + $0x20] sm:$0xff]  ;;  %v96_v27 = vld [vmem:[#allocation5 + $0xb0] sm:$0xff] }
  0x4f   :  { %684 = vmatpush3.bf16.msra.mxu1 %v683_v10  ;;  %655 = vmatprep.subr.bf16.mxu0 %v654_v14  ;;  %v658_v23 = vpack.c.bf16 %v95_v21, %v94_v20  ;;  %v79_v24 = vld [vmem:[#allocation5 + $0x28] sm:$0xff]  ;;  %v110_v25 = vld [vmem:[#allocation5 + $0x120] sm:$0xff]  ;;  %v97_v28 = vld [vmem:[#allocation5 + $0xb8] sm:$0xff]  ;;  %p871_p7 = por %p870_p6, %p869_p5 }
  0x50   :  { %685 = vmatprep.subr.bf16.mxu1 %v900_v0  ;;  %v111_v26 = vld [vmem:[#allocation5 + $0x128] sm:$0xff]  ;;  %v660_v29 = vpack.c.bf16 %v79_v24, %v78_v22  ;;  %v80_v31 = vld [vmem:[#allocation5 + $0x30] sm:$0xff]  ;;  %v662_v32 = vpack.c.bf16 %v97_v28, %v96_v27  ;;  %v81_v33 = vld [vmem:[#allocation5 + $0x38] sm:$0xff] }
  0x51   :  { %v689_v30 = vpack.c.bf16 %v111_v26, %v110_v25  ;;  %v112_v34 = vld [vmem:[#allocation5 + $0x130] sm:$0xff]  ;;  %v113_v35 = vld [vmem:[#allocation5 + $0x138] sm:$0xff]  ;;  %v98_v36 = vld [vmem:[#allocation5 + $0xc0] sm:$0xff]  ;;  %v664_v38 = vpack.c.bf16 %v81_v33, %v80_v31  ;;  %p872_p8 = pnand %p871_p7, %p865_p4 }
  0x52   :  { %657 = vmatpush3.bf16.msra.mxu0 %v656_v18  ;;  %v99_v37 = vld [vmem:[#allocation5 + $0xc8] sm:$0xff]  ;;  %v692_v39 = vpack.c.bf16 %v113_v35, %v112_v34  ;;  %v82_v40 = vld [vmem:[#allocation5 + $0x40] sm:$0xff]  ;;  %v100_v45 = vld [vmem:[#allocation5 + $0xd0] sm:$0xff] }
  0x53   :  { %687 = vmatpush3.bf16.msra.mxu1 %v686_v19  ;;  %659 = vmatprep.subr.bf16.mxu0 %v658_v23  ;;  %v666_v41 = vpack.c.bf16 %v99_v37, %v98_v36  ;;  %v83_v42 = vld [vmem:[#allocation5 + $0x48] sm:$0xff]  ;;  %v114_v43 = vld [vmem:[#allocation5 + $0x140] sm:$0xff]  ;;  %v101_v46 = vld [vmem:[#allocation5 + $0xd8] sm:$0xff] }
  0x54   :  { %688 = vmatprep.subr.bf16.mxu1 %v900_v0  ;;  %v115_v44 = vld [vmem:[#allocation5 + $0x148] sm:$0xff]  ;;  %v992_v47 = vld [vmem:[#allocation2 + $0x8] sm:$0xff]  ;;  %v668_v48 = vpack.c.bf16 %v83_v42, %v82_v40  ;;  %v670_v51 = vpack.c.bf16 %v101_v46, %v100_v45  ;;  %v85_v52 = vld [vmem:[#allocation5 + $0x58] sm:$0xff] }
  0x55   :  { %v695_v49 = vpack.c.bf16 %v115_v44, %v114_v43  ;;  %v84_v50 = vld [vmem:[#allocation5 + $0x50] sm:$0xff]  ;;  %v117_v54 = vld [vmem:[#allocation5 + $0x158] sm:$0xff]  ;;  %v102_v55 = vld [vmem:[#allocation5 + $0xe0] sm:$0xff]  ;;  %186 = vmatprep.mubr.f32.mxu0 %v992_v47 }
  0x56   :  { %661 = vmatpush3.bf16.msra.mxu0 %v660_v29  ;;  %v116_v53 = vld [vmem:[#allocation5 + $0x150] sm:$0xff]  ;;  %v103_v56 = vld [vmem:[#allocation5 + $0xe8] sm:$0xff]  ;;  %v672_v57 = vpack.c.bf16 %v85_v52, %v84_v50  ;;  %v86_v59 = vld [vmem:[#allocation5 + $0x60] sm:$0xff] }
  0x57   :  { %690 = vmatpush3.bf16.msra.mxu1 %v689_v30  ;;  %663 = vmatprep.subr.bf16.mxu0 %v662_v32  ;;  %v698_v58 = vpack.c.bf16 %v117_v54, %v116_v53  ;;  %v674_v60 = vpack.c.bf16 %v103_v56, %v102_v55  ;;  %v87_v61 = vld [vmem:[#allocation5 + $0x68] sm:$0xff]  ;;  %v118_v62 = vld [vmem:[#allocation5 + $0x160] sm:$0xff]  ;;  %v104_v2 = vld [vmem:[#allocation5 + $0xf0] sm:$0xff] }
  0x58   :  { %691 = vmatprep.subr.bf16.mxu1 %v900_v0  ;;  %v119_v63 = vld [vmem:[#allocation5 + $0x168] sm:$0xff]  ;;  %v105_v3 = vld [vmem:[#allocation5 + $0xf8] sm:$0xff]  ;;  %v676_v4 = vpack.c.bf16 %v87_v61, %v86_v59  ;;  %v88_v6 = vld [vmem:[#allocation5 + $0x70] sm:$0xff] }
  0x59   :  { %v701_v5 = vpack.c.bf16 %v119_v63, %v118_v62  ;;  %v678_v7 = vpack.c.bf16 %v105_v3, %v104_v2  ;;  %v89_v8 = vld [vmem:[#allocation5 + $0x78] sm:$0xff]  ;;  %v120_v9 = vld [vmem:[#allocation5 + $0x170] sm:$0xff]  ;;  %v281_v11 = vld [vmem:[#allocation7 + $0x80] sm:$0xff] }
  0x5a   :  { %665 = vmatpush3.bf16.msra.mxu0 %v664_v38  ;;  %v121_v10 = vld [vmem:[#allocation5 + $0x178] sm:$0xff]  ;;  %v282_v12 = vld [vmem:[#allocation7 + $0x88] sm:$0xff]  ;;  %v680_v13 = vpack.c.bf16 %v89_v8, %v88_v6  ;;  %v265_v16 = vld [vmem:[#allocation7] sm:$0xff] }
  0x5b   :  { %693 = vmatpush3.bf16.msra.mxu1 %v692_v39  ;;  %667 = vmatprep.subr.bf16.mxu0 %v666_v41  ;;  %v704_v14 = vpack.c.bf16 %v121_v10, %v120_v9  ;;  %v706_v15 = vpack.c.bf16 %v282_v12, %v281_v11  ;;  %v266_v17 = vld [vmem:[#allocation7 + $0x8] sm:$0xff]  ;;  %v283_v18 = vld [vmem:[#allocation7 + $0x90] sm:$0xff]  ;;  %v284_v19 = vld [vmem:[#allocation7 + $0x98] sm:$0xff] }
  0x5c   :  { %694 = vmatprep.subr.bf16.mxu1 %v900_v0  ;;  %v71_v20 = vld [vmem:[#allocation2] sm:$0xff]  ;;  %v999_v21 = vld [vmem:[#allocation2 + $0x10] sm:$0xff]  ;;  %v708_v22 = vpack.c.bf16 %v266_v17, %v265_v16  ;;  %v710_v23 = vpack.c.bf16 %v284_v19, %v283_v18  ;;  %v267_v24 = vld [vmem:[#allocation7 + $0x10] sm:$0xff] }
  0x5d   :  { %v268_v25 = vld [vmem:[#allocation7 + $0x18] sm:$0xff]  ;;  %v285_v26 = vld [vmem:[#allocation7 + $0xa0] sm:$0xff]  ;;  %v286_v27 = vld [vmem:[#allocation7 + $0xa8] sm:$0xff] }
  0x5e   :  { %669 = vmatpush3.bf16.msra.mxu0 %v668_v48  ;;  %v712_v28 = vpack.c.bf16 %v268_v25, %v267_v24  ;;  %v714_v29 = vpack.c.bf16 %v286_v27, %v285_v26  ;;  %v269_v30 = vld [vmem:[#allocation7 + $0x20] sm:$0xff]  ;;  %v270_v31 = vld [vmem:[#allocation7 + $0x28] sm:$0xff]  ;;  %v287_v33 = vld [vmem:[#allocation7 + $0xb0] sm:$0xff] }
  0x5f   :  { %696 = vmatpush3.bf16.msra.mxu1 %v695_v49  ;;  %671 = vmatprep.subr.bf16.mxu0 %v670_v51  ;;  %v716_v32 = vpack.c.bf16 %v270_v31, %v269_v30  ;;  %v288_v34 = vld [vmem:[#allocation7 + $0xb8] sm:$0xff]  ;;  %v271_v36 = vld [vmem:[#allocation7 + $0x30] sm:$0xff]  ;;  %v289_v39 = vld [vmem:[#allocation7 + $0xc0] sm:$0xff] }
  0x60   :  { %697 = vmatprep.subr.bf16.mxu1 %v900_v0  ;;  %v718_v35 = vpack.c.bf16 %v288_v34, %v287_v33  ;;  %v272_v37 = vld [vmem:[#allocation7 + $0x38] sm:$0xff]  ;;  %v290_v40 = vld [vmem:[#allocation7 + $0xc8] sm:$0xff]  ;;  %v273_v42 = vld [vmem:[#allocation7 + $0x40] sm:$0xff] }
  0x61   :  { %v720_v38 = vpack.c.bf16 %v272_v37, %v271_v36  ;;  %v722_v41 = vpack.c.bf16 %v290_v40, %v289_v39  ;;  %v274_v43 = vld [vmem:[#allocation7 + $0x48] sm:$0xff]  ;;  %v292_v45 = vld [vmem:[#allocation7 + $0xd8] sm:$0xff]  ;;  %v275_v48 = vld [vmem:[#allocation7 + $0x50] sm:$0xff] }
  0x62   :  { %673 = vmatpush3.bf16.msra.mxu0 %v672_v57  ;;  %v724_v44 = vpack.c.bf16 %v274_v43, %v273_v42  ;;  %v276_v49 = vld [vmem:[#allocation7 + $0x58] sm:$0xff]  ;;  %v293_v51 = vld [vmem:[#allocation7 + $0xe0] sm:$0xff]  ;;  %v294_v52 = vld [vmem:[#allocation7 + $0xe8] sm:$0xff] }
  0x63   :  { %699 = vmatpush3.bf16.msra.mxu1 %v698_v58  ;;  %675 = vmatprep.subr.bf16.mxu0 %v674_v60  ;;  %v728_v50 = vpack.c.bf16 %v276_v49, %v275_v48  ;;  %v730_v53 = vpack.c.bf16 %v294_v52, %v293_v51  ;;  %v277_v54 = vld [vmem:[#allocation7 + $0x60] sm:$0xff]  ;;  %v278_v55 = vld [vmem:[#allocation7 + $0x68] sm:$0xff]  ;;  %v295_v57 = vld [vmem:[#allocation7 + $0xf0] sm:$0xff] }
  0x64   :  { %700 = vmatprep.subr.bf16.mxu1 %v900_v0  ;;  %v732_v56 = vpack.c.bf16 %v278_v55, %v277_v54  ;;  %v296_v58 = vld [vmem:[#allocation7 + $0xf8] sm:$0xff]  ;;  %v279_v60 = vld [vmem:[#allocation7 + $0x70] sm:$0xff]  ;;  %v370_v63 = vld [vmem:[#allocation8] sm:$0xff] }
  0x65   :  { %v734_v59 = vpack.c.bf16 %v296_v58, %v295_v57  ;;  %v280_v61 = vld [vmem:[#allocation7 + $0x78] sm:$0xff]  ;;  %v371_v2 = vld [vmem:[#allocation8 + $0x8] sm:$0xff]  ;;  %v372_v3 = vld [vmem:[#allocation8 + $0x10] sm:$0xff] }
  0x66   :  { %677 = vmatpush3.bf16.msra.mxu0 %v676_v4  ;;  %v736_v62 = vpack.c.bf16 %v280_v61, %v279_v60  ;;  %v739_v4 = vpack.c.bf16 %v371_v2, %v370_v63  ;;  %v375_v8 = vld [vmem:[#allocation8 + $0x28] sm:$0xff]  ;;  %v376_v19 = vld [vmem:[#allocation8 + $0x30] sm:$0xff]  ;;  %v381_v27 = vld [vmem:[#allocation8 + $0x58] sm:$0xff] }
  0x67   :  { %702 = vmatpush3.bf16.msra.mxu1 %v701_v5  ;;  %679 = vmatprep.subr.bf16.mxu0 %v678_v7  ;;  %v373_v5 = vld [vmem:[#allocation8 + $0x18] sm:$0xff]  ;;  %v374_v7 = vld [vmem:[#allocation8 + $0x20] sm:$0xff]  ;;  %v379_v24 = vld [vmem:[#allocation8 + $0x48] sm:$0xff] }
  0x68   :  { %703 = vmatprep.subr.bf16.mxu1 %v900_v0  ;;  %v742_v6 = vpack.c.bf16 %v373_v5, %v372_v3  ;;  %v745_v9 = vpack.c.bf16 %v375_v8, %v374_v7  ;;  %v380_v26 = vld [vmem:[#allocation8 + $0x50] sm:$0xff] }
  0x69   :  { %v384_v31 = vld [vmem:[#allocation8 + $0x70] sm:$0xff] }
  0x6a   :  { %681 = vmatpush3.bf16.msra.mxu0 %v680_v13 }
  0x6b   :  { %705 = vmatpush3.bf16.msra.mxu1 %v704_v14  ;;  %707 = vmatprep.subr.bf16.mxu0 %v706_v15 }
  0x6c   :  { %738 = vmatprep.subr.bf16.mxu1 %v900_v0 }
  0x6d   :  { %187 = vmatmul.mubr.f32.vlgmr.msra.gmra.mrb[0].mxu0 %v71_v20  ;;  %v377_v20 = vld [vmem:[#allocation8 + $0x38] sm:$0xff] }
  0x6e   :  { %613 = vmatmul.mubr.f32.vlgmr.msra.gmra.mrb[0].mxu1 %v999_v21  ;;  %709 = vmatpush3.bf16.msra.mxu0 %v708_v22  ;;  %v748_v22 = vpack.c.bf16 %v377_v20, %v376_v19 }
  0x6f   :  { %361 = vmatprep.mubr.f32.mxu0 %v999_v21  ;;  %711 = vmatprep.subr.bf16.mxu0 %v710_v23  ;;  %v378_v23 = vld [vmem:[#allocation8 + $0x40] sm:$0xff] }
  0x70   :  { %647 = vmatprep.mubr.msk.f32.mxu1 %vm901_vm0, %v902_v1  ;;  %v291_v1 = vld [vmem:[#allocation7 + $0xd0] sm:$0xff]  ;;  %740 = vmatpush3.bf16.msra.mxu1 %v739_v4  ;;  %v751_v25 = vpack.c.bf16 %v379_v24, %v378_v23 }
  0x71   :  { %v726_v46 = vpack.c.bf16 %v292_v45, %v291_v1  ;;  %741 = vmatprep.subr.bf16.mxu1 %v900_v0 }
  0x72   :  { %713 = vmatpush3.bf16.msra.mxu0 %v712_v28  ;;  %v754_v28 = vpack.c.bf16 %v381_v27, %v380_v26 }
  0x73   :  { %715 = vmatprep.subr.bf16.mxu0 %v714_v29  ;;  %v383_v29 = vld [vmem:[#allocation8 + $0x68] sm:$0xff] }
  0x74   :  { %743 = vmatpush3.bf16.msra.mxu1 %v742_v6 }
  0x75   :  { %744 = vmatprep.subr.bf16.mxu1 %v900_v0 }
  0x76   :  { %717 = vmatpush3.bf16.msra.mxu0 %v716_v32  ;;  %v385_v32 = vld [vmem:[#allocation8 + $0x78] sm:$0xff] }
  0x77   :  { %719 = vmatprep.subr.bf16.mxu0 %v718_v35  ;;  %v760_v33 = vpack.c.bf16 %v385_v32, %v384_v31 }
  0x78   :  { %746 = vmatpush3.bf16.msra.mxu1 %v745_v9 }
  0x79   :  { %747 = vmatprep.subr.bf16.mxu1 %v900_v0 }
  0x7a   :  { %721 = vmatpush3.bf16.msra.mxu0 %v720_v38 }
  0x7b   :  { %723 = vmatprep.subr.bf16.mxu0 %v722_v41 }
  0x7c   :  { %749 = vmatpush3.bf16.msra.mxu1 %v748_v22 }
  0x7d   :  { %750 = vmatprep.subr.bf16.mxu1 %v900_v0 }
  0x7e   :  { %725 = vmatpush3.bf16.msra.mxu0 %v724_v44 }
  0x7f   :  { %727 = vmatprep.subr.bf16.mxu0 %v726_v46 }
  0x80   :  { %752 = vmatpush3.bf16.msra.mxu1 %v751_v25 }
  0x81   :  { %753 = vmatprep.subr.bf16.mxu1 %v900_v0 }
  0x82   :  { %729 = vmatpush3.bf16.msra.mxu0 %v728_v50 }
  0x83   :  { %731 = vmatprep.subr.bf16.mxu0 %v730_v53 }
  0x84   :  { %755 = vmatpush3.bf16.msra.mxu1 %v754_v28 }
  0x85   :  { %756 = vmatprep.subr.bf16.mxu1 %v900_v0 }
  0x86   :  { %733 = vmatpush3.bf16.msra.mxu0 %v732_v56 }
  0x87   :  { %735 = vmatprep.subr.bf16.mxu0 %v734_v59 }
  0x8a   :  { %737 = vmatpush3.bf16.msra.mxu0 %v736_v62 }
 0x140   :  { %v508_v10 = vpop.f32.mrb[0].mxu0 }
 0x141   :  { %v258_v11 = vpop.f32.mrb[0].mxu1  ;;  %v509_v12 = vpop.f32.mrb[1].mxu0 }
 0x142   :  { %v614_v13 = vpop.f32.mrb[1].mxu1  ;;  %v510_v14 = vadd.f32 %v509_v12, %v508_v10 }
 0x144   :  { %v259_v15 = vadd.f32 %v510_v14, %v258_v11 }
 0x146   :  { %772 = vtanh.f32 %v259_v15 }
 0x150   :  { %v773_v16 = vpop.eup %772 }
 0x151   :  { %v263_v17 = vmul.f32 0.1, %v773_v16 }
 0x153   :  { %v264_v18 = vadd.f32 %v263_v17, %v992_v47  ;;  %v382_v47 = vld [vmem:[#allocation8 + $0x60] sm:$0xff] }
 0x154   :  { %v757_v30 = vpack.c.bf16 %v383_v29, %v382_v47 }
 0x155   :  { %457 = vst [vmem:[#allocation10 + $0x8] sm:$0xff] %v264_v18  ;;  %362 = vmatmul.mubr.f32.vlgmr.msra.gmra.mrb[2].mxu0 %v264_v18 }
 0x156   :  { %758 = vmatpush3.bf16.msra.mxu1 %v757_v30 }
 0x157   :  { %759 = vmatprep.subr.bf16.mxu1 %v900_v0 }
 0x15a   :  { %761 = vmatpush3.bf16.msra.mxu1 %v760_v33 }
 0x228   :  { %v560_v34 = vpop.f32.mrb[2].mxu0 }
 0x229   :  { %v561_v35 = vpop.f32.mrb[3].mxu0 }
 0x22a   :  { %v562_v36 = vadd.f32 %v561_v35, %v560_v34 }
 0x22c   :  { %774 = vtanh.f32 %v562_v36 }
 0x236   :  { %v775_v37 = vpop.eup %774 }
 0x237   :  { %v368_v38 = vmul.f32 0.1, %v775_v37 }
 0x239   :  { %v369_v39 = vadd.f32 %v368_v38, %v999_v21 }
 0x23b   :  { %458 = vst [vmem:[#allocation10 + $0x10] sm:$0xff] %v369_v39  ;;  %648 = vmatmul.mubr.f32.vlgmr.msra.gmra.mrb[2].mxu1 %v369_v39 }
 0x30e   :  { %v452_v40 = vpop.f32.mrb[2].mxu1 }
 0x30f   :  { %456 = vst [vmem:[#allocation10] sm:$0xff] %v452_v40  ;;  %v649_v0 = vpop.f32.mrb[3].mxu1 }
 0x310   :  { %875 = shalt.err (!%p872_p8)
}
 0x311   :  { %s876_s1 = scalar_lea.hbm %s1031_s4, 384 }
 0x312   :  { %p877_p9 = scmp.ne.s32.totalorder %s1031_s4, %s876_s1  ;;  %p880_p10 = scmp.lt.u32.totalorder %s876_s1, %s1031_s4 }
 0x314   :  { %p882_p11 = pnand %p880_p10, %p877_p9 }
 0x316   :  { %885 = shalt.err (!%p882_p11)
}
 0x317   :  { %468 = dma.vmem_to_hbm [thread:$0]  %s466_s25, 384, %s1031_s4, [#allocation4]  }
 0x318   :  { %892 = dma.done.wait [#allocation4], 384  }
 0x319   :  { %893 = vsyncadd [#allocation4], 4294966912 }
 0x31a   :  { %472 = vsyncpa [#allocation3], 1 }
 0x31b   :  { %473 = vsyncpa [#allocation6], 1 }
 0x31c   :  { %474 = vsyncpa [#allocation9], 1 }
 0x31d   :  { %475 = vsyncpa [#allocation4], 1 }

</bundles_post_ra>
